<compile_context>
chip_gen: v7x
topology: tpu7x:2x2x1
jax: 0.10.0
libtpu: 0.0.40
codegen_flags: <defaults>
</compile_context>

<pallas_src>
import jax
import jax.numpy as jnp
from jax.experimental import pallas as pl
from jax.experimental.pallas import tpu as pltpu


def model_kernel(x_ref, w_ref, b_ref, out_ref):
    """out = sigmoid(<x, wA> + bA) * sigmoid(sum_c x * wB[c] + bB).

    x_ref:   (N, Cin, H*W)   VMEM f32  (NCHW with spatial flattened)
    w_ref:   (Cin, H*W + 1)  VMEM f32  [:, :H*W] = fused conv1∘conv2 weight,
                                       [:,  H*W] = fused conv3∘conv4 weight
    b_ref:   (2,)            SMEM f32  [bA, bB] fused biases
    out_ref: (N, H*W)        VMEM f32
    """
    x = x_ref[...]                                   # (N, Cin, HW)
    w = w_ref[...]                                   # (Cin, HW+1)
    hw = out_ref.shape[1]
    w_a = w[:, :hw]                                  # (Cin, HW)
    w_b = w[:, hw:hw + 1]                            # (Cin, 1)
    b_a = b_ref[0]
    b_b = b_ref[1]

    # Branch A (conv1 3x3 valid + conv2 1x1, fused): Ho=Wo=1 so the receptive
    # field is the whole image -> one scalar per batch.  VPU mul + reduces.
    a3 = jnp.sum(x * w_a[None, :, :], axis=2)        # (N, Cin)  lane reduce
    a3 = jnp.sum(a3, axis=1, keepdims=True)          # (N, 1)    sublane reduce
    v3 = jax.nn.sigmoid(a3 + b_a)                    # (N, 1)

    # Branch B (conv3 1x1 + conv4 1x1, fused): per-channel scale + channel sum.
    a6 = jnp.sum(x * w_b[None, :, :], axis=1)        # (N, HW)   sublane reduce
    v6 = jax.nn.sigmoid(a6 + b_b)                    # (N, HW)

    out_ref[...] = v3 * v6                           # (N,1) broadcasts over HW


def model_forward(x_nchw, params):
    """x_nchw: (N, Cin, H, W); params in PyTorch layouts (OIHW weights)."""
    w1, b1, w2, b2, w3, b3, w4, b4 = params
    N, Cin, H, W = x_nchw.shape
    KH, KW = w1.shape[2], w1.shape[3]
    HW = H * W
    assert H == KH and W == KW, "forward only shape-valid when Ho=Wo=1 (H=W=3)"

    # ---- trace-time algebraic fusion (float32) --------------------------
    w2v = w2.reshape(-1).astype(jnp.float32)                       # (C1,)
    wA = jnp.tensordot(w2v, w1.astype(jnp.float32), axes=([0], [0]))   # (Cin,KH,KW)
    wA = wA.reshape(Cin, KH * KW)                                  # (Cin, 9)
    bA = jnp.dot(w2v, b1.astype(jnp.float32)) + b2[0]              # scalar

    w4v = w4.reshape(-1).astype(jnp.float32)                       # (C1,)
    w3m = w3.reshape(w3.shape[0], Cin).astype(jnp.float32)         # (C1, Cin)
    wB = jnp.dot(w4v, w3m).reshape(Cin, 1)                         # (Cin, 1)
    bB = jnp.dot(w4v, b3.astype(jnp.float32)) + b4[0]              # scalar

    wpack = jnp.concatenate([wA, wB], axis=1)                      # (Cin, HW+1)
    bpack = jnp.stack([bA, bB]).astype(jnp.float32)                # (2,)

    x3 = x_nchw.reshape(N, Cin, HW).astype(jnp.float32)            # free reshape

    out = pl.pallas_call(
        model_kernel,
        out_shape=jax.ShapeDtypeStruct((N, HW), jnp.float32),
        in_specs=[
            pl.BlockSpec(memory_space=pltpu.MemorySpace.VMEM),     # x
            pl.BlockSpec(memory_space=pltpu.MemorySpace.VMEM),     # packed weights
            pl.BlockSpec(memory_space=pltpu.MemorySpace.SMEM),     # packed biases
        ],
        out_specs=pl.BlockSpec(memory_space=pltpu.MemorySpace.VMEM),
    )(x3, wpack, bpack)

    return out.reshape(N, 1, H, W)                                 # free reshape


def init_params(key, cin=5, c1=6):
    """PyTorch-layout parameters (OIHW weights, 1-D biases)."""
    ks = jax.random.split(key, 8)
    w1 = jax.random.normal(ks[0], (c1, cin, 3, 3), jnp.float32) * 0.1
    b1 = jax.random.normal(ks[1], (c1,), jnp.float32) * 0.1
    w2 = jax.random.normal(ks[2], (1, c1, 1, 1), jnp.float32) * 0.1
    b2 = jax.random.normal(ks[3], (1,), jnp.float32) * 0.1
    w3 = jax.random.normal(ks[4], (c1, cin, 1, 1), jnp.float32) * 0.1
    b3 = jax.random.normal(ks[5], (c1,), jnp.float32) * 0.1
    w4 = jax.random.normal(ks[6], (1, c1, 1, 1), jnp.float32) * 0.1
    b4 = jax.random.normal(ks[7], (1,), jnp.float32) * 0.1
    return (w1, b1, w2, b2, w3, b3, w4, b4)


def ref_forward(x_nchw, params):
    """Plain-JAX reference with PyTorch semantics (NCHW / OIHW, unfused)."""
    w1, b1, w2, b2, w3, b3, w4, b4 = params
    dn = ('NCHW', 'OIHW', 'NCHW')
    conv = lambda x, w: jax.lax.conv_general_dilated(
        x, w, window_strides=(1, 1), padding='VALID', dimension_numbers=dn)
    v1 = conv(x_nchw, w1) + b1[None, :, None, None]
    v2 = conv(v1, w2) + b2[None, :, None, None]
    v3 = jax.nn.sigmoid(v2)
    v4 = conv(x_nchw, w3) + b3[None, :, None, None]
    v5 = conv(v4, w4) + b4[None, :, None, None]
    v6 = jax.nn.sigmoid(v5)
    return v3 * v6


if __name__ == "__main__":
    key = jax.random.PRNGKey(0)
    k_x, k_p = jax.random.split(key)

    N, CIN, H, W = 2, 5, 3, 3     # spatial=3 so the original forward's broadcast is valid
    x1 = jax.random.normal(k_x, (N, CIN, H, W), jnp.float32)
    params = init_params(k_p, cin=CIN, c1=6)

    fwd = jax.jit(model_forward)
    out = jax.block_until_ready(fwd(x1, params))

    ref = jax.block_until_ready(ref_forward(x1, params))
    assert out.shape == (N, 1, H, W), out.shape
    assert jnp.allclose(out, ref, rtol=1e-5, atol=1e-5), (
        float(jnp.max(jnp.abs(out - ref))))

    print("KERNEL_OK")
</pallas_src>

<mosaic_0001>
module attributes {stable_mosaic.version = 11 : i64} {
  func.func @model_kernel(%arg0: memref<2x5x9xf32, #tpu.memory_space<vmem>>, %arg1: memref<5x10xf32, #tpu.memory_space<vmem>>, %arg2: memref<2xf32, #tpu.memory_space<smem>>, %arg3: memref<2x9xf32, #tpu.memory_space<vmem>>) attributes {dimension_semantics = [], scalar_prefetch = 0 : i64, scratch_operands = 0 : i64, tpu.core_type = #tpu.core_type<tc>} {
    %c0 = arith.constant 0 : index
    %c0_0 = arith.constant 0 : index
    %c0_1 = arith.constant 0 : index
    %0 = vector.load %arg0[%c0, %c0_0, %c0_1] : memref<2x5x9xf32, #tpu.memory_space<vmem>>, vector<2x5x9xf32>
    %c0_2 = arith.constant 0 : index
    %c0_3 = arith.constant 0 : index
    %1 = vector.load %arg1[%c0_2, %c0_3] : memref<5x10xf32, #tpu.memory_space<vmem>>, vector<5x10xf32>
    %2 = vector.extract_strided_slice %1 {offsets = [0, 0], sizes = [5, 9], strides = [1, 1]} : vector<5x10xf32> to vector<5x9xf32>
    %3 = vector.extract_strided_slice %1 {offsets = [0, 9], sizes = [5, 1], strides = [1, 1]} : vector<5x10xf32> to vector<5x1xf32>
    %c0_4 = arith.constant 0 : index
    %4 = memref.load %arg2[%c0_4] : memref<2xf32, #tpu.memory_space<smem>>
    %c1 = arith.constant 1 : index
    %5 = memref.load %arg2[%c1] : memref<2xf32, #tpu.memory_space<smem>>
    %6 = vector.shape_cast %2 : vector<5x9xf32> to vector<1x5x9xf32>
    %7 = vector.broadcast %6 : vector<1x5x9xf32> to vector<2x5x9xf32>
    %8 = arith.mulf %0, %7 : vector<2x5x9xf32>
    %cst = arith.constant dense<0.000000e+00> : vector<2x5xf32>
    %9 = vector.multi_reduction <add>, %8, %cst [2] : vector<2x5x9xf32> to vector<2x5xf32>
    %cst_5 = arith.constant dense<0.000000e+00> : vector<2xf32>
    %10 = vector.multi_reduction <add>, %9, %cst_5 [1] : vector<2x5xf32> to vector<2xf32>
    %11 = vector.shape_cast %10 : vector<2xf32> to vector<2x1xf32>
    %12 = vector.broadcast %4 : f32 to vector<2x1xf32>
    %13 = arith.addf %11, %12 : vector<2x1xf32>
    %14 = arith.negf %13 : vector<2x1xf32>
    %15 = math.exp %14 : vector<2x1xf32>
    %cst_6 = arith.constant 1.000000e+00 : f32
    %16 = vector.broadcast %cst_6 : f32 to vector<2x1xf32>
    %17 = arith.addf %16, %15 : vector<2x1xf32>
    %18 = arith.divf %16, %17 : vector<2x1xf32>
    %19 = vector.shape_cast %3 : vector<5x1xf32> to vector<1x5x1xf32>
    %20 = vector.broadcast %19 : vector<1x5x1xf32> to vector<2x5x9xf32>
    %21 = arith.mulf %0, %20 : vector<2x5x9xf32>
    %cst_7 = arith.constant dense<0.000000e+00> : vector<2x9xf32>
    %22 = vector.multi_reduction <add>, %21, %cst_7 [1] : vector<2x5x9xf32> to vector<2x9xf32>
    %23 = vector.broadcast %5 : f32 to vector<2x9xf32>
    %24 = arith.addf %22, %23 : vector<2x9xf32>
    %25 = arith.negf %24 : vector<2x9xf32>
    %26 = math.exp %25 : vector<2x9xf32>
    %cst_8 = arith.constant 1.000000e+00 : f32
    %27 = vector.broadcast %cst_8 : f32 to vector<2x9xf32>
    %28 = arith.addf %27, %26 : vector<2x9xf32>
    %29 = arith.divf %27, %28 : vector<2x9xf32>
    %30 = vector.broadcast %18 : vector<2x1xf32> to vector<2x9xf32>
    %31 = arith.mulf %30, %29 : vector<2x9xf32>
    %c0_9 = arith.constant 0 : index
    %c0_10 = arith.constant 0 : index
    %32 = vector.load %arg3[%c0_9, %c0_10] : memref<2x9xf32, #tpu.memory_space<vmem>>, vector<2x9xf32>
    tpu.vector_store %arg3[%c0_9, %c0_10], %31 {strides = array<i32>} : memref<2x9xf32, #tpu.memory_space<vmem>>, vector<2x9xf32>,
    return
  }
}

</mosaic_0001>

<bundles_post_ra>
// kernel: model_forward.1
= control target key start
LH: loop header
LB: loop body
LE: loop exit
PB: predicated region body
PF: predicated region fallthrough
CT: control target
= control target key end

     0   :  { %8 = vsyncpa [#allocation3], 0  ;;  %s193_s0 = inlined_call_operand.vmem [shape: f32[2,5,9], index: 0, kind: input, shape index: {}]   ;;  %s194_s1 = inlined_call_operand.vmem [shape: f32[5,10], index: 1, kind: input, shape index: {}]   ;;  %s195_s2 = inlined_call_operand.vmem [shape: f32[2], index: 2, kind: input, shape index: {}]   ;;  %s196_s3 = inlined_call_operand.vmem [shape: f32[2,9], index: 3, kind: output, shape index: {}]  }
   0x1   :  { %s19_s14 = sshll.u32 %s195_s2, 4  ;;  %s20_s14 = int_to_ptr.vmem [resolvable:$true] %s19_s14 }
   0x2   :  { %s136_s15 = scalar_lea.vmem %s20_s14, 16  ;;  %p141_p1 = scmp.lt.s32.totalorder %s20_s14, %s20_s14 }
   0x3   :  { %p137_p0 = scmp.ne.s32.totalorder %s20_s14, %s136_s15  ;;  %p142_p2 = scmp.lt.s32.totalorder %s136_s15, %s136_s15 }
   0x5   :  { %p143_p3 = por %p142_p2, %p141_p1 }
   0x7   :  { %p144_p4 = pnand %p143_p3, %p137_p0 }
   0x9   :  { %147 = shalt.err (!%p144_p4)
}
   0xa   :  { %s150_s16 = smov [#allocation2]  }
   0xb   :  { %22 = dma.vmem_to_smem %s20_s14, 16, %s150_s16, [#allocation3]  }
   0xc   :  { %148 = dma.done.wait [#allocation3], 16  }
   0xd   :  { %149 = vsyncadd [#allocation3], 4294967280 }
   0xe   :  { %26 = sfence }
   0xf   :  { %v27_v0 = vld [vmem:[%s193_s0] sm:$0x1f]  ;;  %vm34_vm0 = vcmask 69632   ;;  %v28_v3 = vld [vmem:[%s193_s0 + $0x8] sm:$0x1f]  ;;  %v151_v4 = vmov 9   ;;  %v43_v8 = vlaneseq }
  0x10   :  { %v29_v1 = vld [vmem:[%s194_s1] sm:$0x1f]  ;;  %122 = vset.pattern.permute.xlu1 %v151_v4  ;;  %123 = vset.pattern.permute.xlu0 %v151_v4  ;;  %vm53_vm1 = vcmask 1041409   ;;  %vm56_vm2 = vcmask 33792   ;;  %s116_s0 = sld [smem:[#allocation2 + $0x1]]  ;;  %s30_s1 = sld [smem:[#allocation2]] }
  0x11   :  { %v32_v2 = vmul.f32 %v29_v1, %v27_v0  ;;  %v33_v5 = vmul.f32 %v29_v1, %v28_v3  ;;  %70 = vperm.xlu1 %122, %v29_v1   ;;  %v44_v9 = vand.u32 127, %v43_v8  ;;  %v46_v10 = vshrl.u32 %v43_v8, 7 }
  0x12   :  { %vm109_vm3 = vcmask 66560  }
  0x13   :  { %v35_v6 = vsel %vm34_vm0, %v32_v2, 0.0  ;;  %v38_v7 = vsel %vm34_vm0, %v33_v5, 0.0  ;;  %v47_v12 = vsub.s32 %v44_v9, %v46_v10 }
  0x14   :  { %36 = vadd.xlane.f32.xlu0 %v35_v6 }
  0x16   :  { %v89_v34 = vstv %s116_s0  ;;  %v60_v40 = vstv %s30_s1 }
  0x18   :  { %39 = vadd.xlane.f32.xlu0 %v38_v7 }
  0x90   :  { %v71_v18 = vpop.permute.xlu1 %70 }
  0x91   :  { %v73_v19 = vmul.f32 %v71_v18, %v27_v0  ;;  %v74_v20 = vmul.f32 %v71_v18, %v28_v3 }
  0x93   :  { %v75_v21 = vsel %vm34_vm0, %v73_v19, 0.0  ;;  %v82_v22 = vsel %vm34_vm0, %v74_v20, 0.0 }
  0x94   :  { %v76_v23 = vrot.slane %v75_v21, 4  ;;  %v83_v24 = vrot.slane %v82_v22, 4 }
  0x96   :  { %v77_v25 = vadd.f32 %v76_v23, %v75_v21  ;;  %v84_v26 = vadd.f32 %v83_v24, %v82_v22 }
  0x98   :  { %v78_v27 = vrot.slane %v77_v25, 2  ;;  %v85_v28 = vrot.slane %v84_v26, 2 }
  0x9a   :  { %v79_v29 = vadd.f32 %v78_v27, %v77_v25  ;;  %v86_v30 = vadd.f32 %v85_v28, %v84_v26 }
  0x9c   :  { %v80_v31 = vrot.slane %v79_v29, 1  ;;  %v87_v32 = vrot.slane %v86_v30, 1 }
  0x9e   :  { %v81_v33 = vadd.f32 %v80_v31, %v79_v29  ;;  %v88_v35 = vadd.f32 %v87_v32, %v86_v30 }
  0xa0   :  { %v90_v36 = vadd.f32 %v89_v34, %v81_v33  ;;  %v91_v37 = vadd.f32 %v89_v34, %v88_v35 }
  0xa1   :  { %v37_v11 = vpop.xlane.xlu0 %36 }
  0xa2   :  { %v48_v14 = vrot.slane %v37_v11, %v47_v12  ;;  %v118_v38 = vmul.f32 -1.442695, %v90_v36  ;;  %v119_v39 = vmul.f32 -1.442695, %v91_v37 }
  0xa4   :  { %124 = vpow2.f32 %v118_v38 }
  0xa5   :  { %v40_v13 = vpop.xlane.xlu0 %39  ;;  %126 = vpow2.f32 %v119_v39 }
  0xa6   :  { %v52_v15 = vrot.slane %v40_v13, %v47_v12 }
  0xa8   :  { %v54_v16 = vsel %vm53_vm1, %v52_v15, %v48_v14 }
  0xa9   :  { %v57_v17 = vsel %vm56_vm2, %v54_v16, 0.0 }
  0xaa   :  { %58 = vadd.xlane.f32.xlu1 %v57_v17 }
  0xae   :  { %v125_v44 = vpop.eup %124 }
  0xaf   :  { %v127_v45 = vpop.eup %126  ;;  %v98_v46 = vadd.f32 1.0, %v125_v44 }
  0xb0   :  { %v99_v47 = vadd.f32 1.0, %v127_v45 }
 0x137   :  { %v59_v41 = vpop.xlane.xlu1 %58 }
 0x138   :  { %v61_v42 = vadd.f32 %v60_v40, %v59_v41 }
 0x13a   :  { %v117_v43 = vmul.f32 -1.442695, %v61_v42 }
 0x13c   :  { %128 = vpow2.f32 %v117_v43 }
 0x13d   :  { %130 = vrcp.f32 %v98_v46 }
 0x13e   :  { %132 = vrcp.f32 %v99_v47 }
 0x146   :  { %v129_v48 = vpop.eup %128 }
 0x147   :  { %v65_v49 = vadd.f32 1.0, %v129_v48  ;;  %v131_v50 = vpop.eup %130 }
 0x148   :  { %v133_v51 = vpop.eup %132 }
 0x149   :  { %134 = vrcp.f32 %v65_v49  ;;  %v106_v53 = vsel %vm53_vm1, %v133_v51, %v131_v50 }
 0x153   :  { %v135_v52 = vpop.eup %134 }
 0x154   :  { %v108_v54 = vmul.f32 %v135_v52, %v106_v53 }
 0x156   :  { %110 = vst.msk [vmem:[%s196_s3] sm:$0x3] %vm109_vm3, %v108_v54 }
 0x157   :  { %115 = vsyncpa [#allocation3], 1 }

</bundles_post_ra>
